<compile_context>
chip_gen: v5e
topology: v5e:2x2
jax: 0.10.0
libtpu: 0.0.40
codegen_flags: <defaults>
</compile_context>

<pallas_src>
import functools

import numpy as np

import jax
import jax.numpy as jnp
from jax import lax
from jax.experimental import pallas as pl
from jax.experimental.pallas import tpu as pltpu


def _norm_act_conv_kernel(x_ref, gamma_ref, beta_ref, p_ref, t_ref, bias_ref,
                          o_ref, a_ref, *, eps, inv_count):
    # x_ref:     (B, H, W*Cin)       raw input, NHWC with (W, Cin) flattened
    # gamma_ref: (1, W*Cin)          BN gamma, tiled over W
    # beta_ref:  (1, W*Cin)          BN beta, tiled over W
    # p_ref:     (W*Cin, W*Cin)      channel-gather: sums the W lane-groups per
    #                                channel, result re-tiled over W
    # t_ref:     (3, W*Cin, W*Cout)  per-kh block-Toeplitz conv weights
    # bias_ref:  (1, W*Cout)         conv bias, tiled over W
    # o_ref:     (B, H, W*Cout)
    # a_ref:     (B*(H+2), W*Cin)    scratch: stacked, H-padded post-BN/ReLU act
    B, H, WCin = x_ref.shape
    S = H + 2                              # per-image slab: halo + H rows + halo

    x = x_ref[...]                         # (B, H, W*Cin)
    x2d = x.reshape(B * H, WCin)           # leading-dim merge, layout-preserving

    # --- BatchNorm2d training-mode batch stats, in-kernel (biased variance) ---
    s1 = jnp.sum(x2d, axis=0, keepdims=True)          # (1, W*Cin) per-(w,c) sums
    s2 = jnp.sum(x2d * x2d, axis=0, keepdims=True)
    cs1 = jnp.dot(s1, p_ref[...], preferred_element_type=jnp.float32)
    cs2 = jnp.dot(s2, p_ref[...], preferred_element_type=jnp.float32)
    mean = cs1 * inv_count                             # per-channel, tiled over W
    var = cs2 * inv_count - mean * mean
    scale = gamma_ref[...] / jnp.sqrt(var + eps)
    shift = beta_ref[...] - mean * scale

    # --- zero the whole padded stack once; halo rows must stay exactly 0
    #     (conv zero-padding applies AFTER BN+ReLU) ---
    a_ref[...] = jnp.zeros_like(a_ref)

    # BN + ReLU into the interior rows of each image slab (VPU).
    for b in range(B):
        a_ref[b * S + 1:b * S + 1 + H, :] = jnp.maximum(
            x[b] * scale + shift, 0.0)

    # --- 3x3 conv: three MXU matmuls over the whole image stack.  LHS slices
    # move only along the sublane axis; dots stay adjacent accumulating into one
    # acc so Mosaic can use the MXU result buffer on v7x. ---
    M = B * S - 2
    acc = jnp.dot(a_ref[0:M, :], t_ref[0],
                  preferred_element_type=jnp.float32)
    acc = acc + jnp.dot(a_ref[1:M + 1, :], t_ref[1],
                        preferred_element_type=jnp.float32)
    acc = acc + jnp.dot(a_ref[2:M + 2, :], t_ref[2],
                        preferred_element_type=jnp.float32)
    acc = acc + bias_ref[...]

    # Lane-dense stores (last dim = W*Cout = 128); skip the 2 junk rows/image.
    for b in range(B):
        o_ref[b] = acc[b * S:b * S + H, :].astype(o_ref.dtype)


def _build_toeplitz(conv_w_oihw, W):
    """conv_w_oihw (Cout, Cin, 3, 3) -> per-kh block-Toeplitz (3, W*Cin, W*Cout).

    T[kh, iw*Cin + ci, w*Cout + co] = weight[kh, kw, ci, co] with iw = w+kw-1;
    out-of-range taps (conv zero-padding along W) simply have no entry.
    """
    Cout, Cin, KH, KW = conv_w_oihw.shape
    w_hwio = jnp.transpose(conv_w_oihw, (2, 3, 1, 0)).astype(jnp.float32)
    sel = np.zeros((KW, W, W), np.float32)          # sel[kw, iw, w]
    for kw in range(KW):
        for w in range(W):
            iw = w + kw - 1
            if 0 <= iw < W:
                sel[kw, iw, w] = 1.0
    t5 = jnp.einsum('abcd,bef->aecfd', w_hwio, jnp.asarray(sel))
    return t5.reshape(KH, W * Cin, W * Cout)


def _build_channel_gather(Cin, W):
    """(W*Cin, W*Cin) 0/1 matrix: out[w*Cin+c] = sum_iw in[iw*Cin+c]."""
    p = np.zeros((W * Cin, W * Cin), np.float32)
    for iw in range(W):
        for w in range(W):
            for c in range(Cin):
                p[iw * Cin + c, w * Cin + c] = 1.0
    return jnp.asarray(p)


def norm_act_conv(x_nchw, gamma, beta, conv_w_oihw, conv_b, *, eps=1e-5):
    """x_nchw: (N, Cin, H, W).  Returns (N, Cout, H, W), matching PyTorch."""
    N, Cin, H, W = x_nchw.shape
    Cout = conv_w_oihw.shape[0]
    assert conv_w_oihw.shape[2:] == (3, 3), "kernel specialized to 3x3/s1/p1"
    WCin, WCout = W * Cin, W * Cout

    # Layout glue: NCHW -> (N, H, W*Cin).  BN stats are computed in-kernel, so
    # this transpose is the only extra HBM traversal of x.
    # TODO(synk): accept NHWC input to drop this read+write at production sizes.
    x_flat = jnp.transpose(x_nchw, (0, 2, 3, 1)).reshape(N, H, WCin)
    x_flat = x_flat.astype(jnp.float32)

    t = _build_toeplitz(conv_w_oihw, W)                  # (3, W*Cin, W*Cout)
    p = _build_channel_gather(Cin, W)                    # (W*Cin, W*Cin)
    gamma_w = jnp.tile(gamma, W).reshape(1, WCin).astype(jnp.float32)
    beta_w = jnp.tile(beta, W).reshape(1, WCin).astype(jnp.float32)
    bias_w = jnp.tile(conv_b, W).reshape(1, WCout).astype(jnp.float32)

    kernel = functools.partial(_norm_act_conv_kernel,
                               eps=float(eps),
                               inv_count=1.0 / float(N * H * W))

    # Whole batch in one grid step (folds N into the matmul M and makes the
    # in-kernel batch stats exact).  All operands are grid-invariant here;
    # with a >1 grid they would deserve pipeline_mode=pl.Buffered(1) since
    # their index_maps are constant (no double buffer needed).
    out = pl.pallas_call(
        kernel,
        out_shape=jax.ShapeDtypeStruct((N, H, WCout), jnp.float32),
        grid_spec=pltpu.PrefetchScalarGridSpec(
            num_scalar_prefetch=0,
            grid=(1,),
            in_specs=[
                pl.BlockSpec((N, H, WCin), lambda i: (0, 0, 0)),
                pl.BlockSpec((1, WCin), lambda i: (0, 0)),
                pl.BlockSpec((1, WCin), lambda i: (0, 0)),
                pl.BlockSpec((WCin, WCin), lambda i: (0, 0)),
                pl.BlockSpec((3, WCin, WCout), lambda i: (0, 0, 0)),
                pl.BlockSpec((1, WCout), lambda i: (0, 0)),
            ],
            out_specs=pl.BlockSpec((N, H, WCout), lambda i: (0, 0, 0)),
            scratch_shapes=[pltpu.VMEM((N * (H + 2), WCin), jnp.float32)],
        ),
        compiler_params=pltpu.CompilerParams(
            dimension_semantics=("arbitrary",)),
    )(x_flat, gamma_w, beta_w, p, t, bias_w)

    # (N, H, W*Cout) -> PyTorch NCHW.
    out = out.reshape(N, H, W, Cout)
    return jnp.transpose(out, (0, 3, 1, 2))


def _reference(x_nchw, gamma, beta, conv_w_oihw, conv_b, *, eps=1e-5):
    mean = jnp.mean(x_nchw, axis=(0, 2, 3))
    var = jnp.mean((x_nchw - mean[None, :, None, None]) ** 2, axis=(0, 2, 3))
    a = (x_nchw - mean[None, :, None, None]) / jnp.sqrt(var + eps)[None, :, None, None]
    a = a * gamma[None, :, None, None] + beta[None, :, None, None]
    a = jnp.maximum(a, 0.0)
    a_nhwc = jnp.transpose(a, (0, 2, 3, 1))
    w_hwio = jnp.transpose(conv_w_oihw, (2, 3, 1, 0))
    y = lax.conv_general_dilated(
        a_nhwc, w_hwio, window_strides=(1, 1), padding="SAME",
        dimension_numbers=("NHWC", "HWIO", "NHWC"))
    y = y + conv_b[None, None, None, :]
    return jnp.transpose(y, (0, 3, 1, 2))


if __name__ == "__main__":
    key = jax.random.PRNGKey(0)
    k_x, k_g, k_b, k_w, k_cb = jax.random.split(key, 5)

    N, Cin, Cout, H, W = 2, 4, 8, 16, 16
    x = jax.random.normal(k_x, (N, Cin, H, W), dtype=jnp.float32)
    gamma = 1.0 + 0.1 * jax.random.normal(k_g, (Cin,), dtype=jnp.float32)
    beta = 0.1 * jax.random.normal(k_b, (Cin,), dtype=jnp.float32)
    conv_w = 0.1 * jax.random.normal(k_w, (Cout, Cin, 3, 3), dtype=jnp.float32)
    conv_b = 0.1 * jax.random.normal(k_cb, (Cout,), dtype=jnp.float32)

    y = jax.block_until_ready(norm_act_conv(x, gamma, beta, conv_w, conv_b))
    y_ref = jax.block_until_ready(_reference(x, gamma, beta, conv_w, conv_b))

    assert y.shape == (N, Cout, H, W), y.shape
    max_err = float(jnp.max(jnp.abs(y - y_ref)))
    assert jnp.allclose(y, y_ref, rtol=1e-4, atol=1e-4), max_err
    print("KERNEL_OK")
</pallas_src>

<mosaic_0001>
module attributes {stable_mosaic.version = 11 : i64} {
  func.func @_norm_act_conv_kernel(%arg0: i32, %arg1: memref<2x16x64xf32, #tpu.memory_space<vmem>>, %arg2: memref<1x64xf32, #tpu.memory_space<vmem>>, %arg3: memref<1x64xf32, #tpu.memory_space<vmem>>, %arg4: memref<64x64xf32, #tpu.memory_space<vmem>>, %arg5: memref<3x64x128xf32, #tpu.memory_space<vmem>>, %arg6: memref<1x128xf32, #tpu.memory_space<vmem>>, %arg7: memref<2x16x128xf32, #tpu.memory_space<vmem>>, %arg8: memref<36x64xf32, #tpu.memory_space<vmem>>) attributes {dimension_semantics = [#tpu.dimension_semantics<arbitrary>], iteration_bounds = array<i64: 1>, scalar_prefetch = 0 : i64, scratch_operands = 1 : i64, tpu.core_type = #tpu.core_type<tc>, window_params = [{pipeline_mode = #tpu.pipeline_mode<synchronous>, transform_indices = @transform_0, window_bounds = array<i64: 2, 16, 64>}, {pipeline_mode = #tpu.pipeline_mode<synchronous>, transform_indices = @transform_1, window_bounds = array<i64: 1, 64>}, {pipeline_mode = #tpu.pipeline_mode<synchronous>, transform_indices = @transform_2, window_bounds = array<i64: 1, 64>}, {pipeline_mode = #tpu.pipeline_mode<synchronous>, transform_indices = @transform_3, window_bounds = array<i64: 64, 64>}, {pipeline_mode = #tpu.pipeline_mode<synchronous>, transform_indices = @transform_4, window_bounds = array<i64: 3, 64, 128>}, {pipeline_mode = #tpu.pipeline_mode<synchronous>, transform_indices = @transform_5, window_bounds = array<i64: 1, 128>}, {pipeline_mode = #tpu.pipeline_mode<synchronous>, transform_indices = @transform_6, window_bounds = array<i64: 2, 16, 128>}]} {
    %c0 = arith.constant 0 : index
    %c0_0 = arith.constant 0 : index
    %c0_1 = arith.constant 0 : index
    %0 = vector.load %arg1[%c0, %c0_0, %c0_1] : memref<2x16x64xf32, #tpu.memory_space<vmem>>, vector<2x16x64xf32>
    %1 = vector.shape_cast %0 : vector<2x16x64xf32> to vector<32x64xf32>
    %cst = arith.constant dense<0.000000e+00> : vector<64xf32>
    %2 = vector.multi_reduction <add>, %1, %cst [0] : vector<32x64xf32> to vector<64xf32>
    %3 = vector.shape_cast %2 : vector<64xf32> to vector<1x64xf32>
    %4 = arith.mulf %1, %1 : vector<32x64xf32>
    %cst_2 = arith.constant dense<0.000000e+00> : vector<64xf32>
    %5 = vector.multi_reduction <add>, %4, %cst_2 [0] : vector<32x64xf32> to vector<64xf32>
    %6 = vector.shape_cast %5 : vector<64xf32> to vector<1x64xf32>
    %c0_3 = arith.constant 0 : index
    %c0_4 = arith.constant 0 : index
    %7 = vector.load %arg4[%c0_3, %c0_4] : memref<64x64xf32, #tpu.memory_space<vmem>>, vector<64x64xf32>
    %cst_5 = arith.constant dense<0.000000e+00> : vector<1x64xf32>
    %8 = tpu.matmul %3, %7, %cst_5 {dimension_numbers = #tpu.dot_dimension_numbers<[1], [0], [0], [1], [0, 0, 1, 1], [], []>} : vector<1x64xf32>, vector<64x64xf32>, vector<1x64xf32> -> vector<1x64xf32>
    %c0_6 = arith.constant 0 : index
    %c0_7 = arith.constant 0 : index
    %9 = vector.load %arg4[%c0_6, %c0_7] : memref<64x64xf32, #tpu.memory_space<vmem>>, vector<64x64xf32>
    %cst_8 = arith.constant dense<0.000000e+00> : vector<1x64xf32>
    %10 = tpu.matmul %6, %9, %cst_8 {dimension_numbers = #tpu.dot_dimension_numbers<[1], [0], [0], [1], [0, 0, 1, 1], [], []>} : vector<1x64xf32>, vector<64x64xf32>, vector<1x64xf32> -> vector<1x64xf32>
    %cst_9 = arith.constant 0.001953125 : f32
    %11 = vector.broadcast %cst_9 : f32 to vector<1x64xf32>
    %12 = arith.mulf %8, %11 : vector<1x64xf32>
    %cst_10 = arith.constant 0.001953125 : f32
    %13 = vector.broadcast %cst_10 : f32 to vector<1x64xf32>
    %14 = arith.mulf %10, %13 : vector<1x64xf32>
    %15 = arith.mulf %12, %12 : vector<1x64xf32>
    %16 = arith.subf %14, %15 : vector<1x64xf32>
    %c0_11 = arith.constant 0 : index
    %c0_12 = arith.constant 0 : index
    %17 = vector.load %arg2[%c0_11, %c0_12] : memref<1x64xf32, #tpu.memory_space<vmem>>, vector<1x64xf32>
    %cst_13 = arith.constant 9.99999974E-6 : f32
    %18 = vector.broadcast %cst_13 : f32 to vector<1x64xf32>
    %19 = arith.addf %16, %18 : vector<1x64xf32>
    %20 = math.sqrt %19 : vector<1x64xf32>
    %21 = arith.divf %17, %20 : vector<1x64xf32>
    %c0_14 = arith.constant 0 : index
    %c0_15 = arith.constant 0 : index
    %22 = vector.load %arg3[%c0_14, %c0_15] : memref<1x64xf32, #tpu.memory_space<vmem>>, vector<1x64xf32>
    %23 = arith.mulf %12, %21 : vector<1x64xf32>
    %24 = arith.subf %22, %23 : vector<1x64xf32>
    %cst_16 = arith.constant 0.000000e+00 : f32
    %25 = vector.broadcast %cst_16 : f32 to vector<36x64xf32>
    %c0_17 = arith.constant 0 : index
    %c0_18 = arith.constant 0 : index
    %26 = vector.load %arg8[%c0_17, %c0_18] : memref<36x64xf32, #tpu.memory_space<vmem>>, vector<36x64xf32>
    tpu.vector_store %arg8[%c0_17, %c0_18], %25 {strides = array<i32>} : memref<36x64xf32, #tpu.memory_space<vmem>>, vector<36x64xf32>,
    %27 = vector.extract_strided_slice %0 {offsets = [0, 0, 0], sizes = [1, 16, 64], strides = [1, 1, 1]} : vector<2x16x64xf32> to vector<1x16x64xf32>
    %28 = vector.shape_cast %27 : vector<1x16x64xf32> to vector<16x64xf32>
    %29 = vector.broadcast %21 : vector<1x64xf32> to vector<16x64xf32>
    %30 = arith.mulf %28, %29 : vector<16x64xf32>
    %31 = vector.broadcast %24 : vector<1x64xf32> to vector<16x64xf32>
    %32 = arith.addf %30, %31 : vector<16x64xf32>
    %cst_19 = arith.constant 0.000000e+00 : f32
    %33 = vector.broadcast %cst_19 : f32 to vector<16x64xf32>
    %34 = arith.maximumf %32, %33 : vector<16x64xf32>
    %c1 = arith.constant 1 : index
    %c0_20 = arith.constant 0 : index
    %35 = vector.load %arg8[%c1, %c0_20] : memref<36x64xf32, #tpu.memory_space<vmem>>, vector<16x64xf32>
    tpu.vector_store %arg8[%c1, %c0_20], %34 {strides = array<i32>} : memref<36x64xf32, #tpu.memory_space<vmem>>, vector<16x64xf32>,
    %36 = vector.extract_strided_slice %0 {offsets = [1, 0, 0], sizes = [1, 16, 64], strides = [1, 1, 1]} : vector<2x16x64xf32> to vector<1x16x64xf32>
    %37 = vector.shape_cast %36 : vector<1x16x64xf32> to vector<16x64xf32>
    %38 = vector.broadcast %21 : vector<1x64xf32> to vector<16x64xf32>
    %39 = arith.mulf %37, %38 : vector<16x64xf32>
    %40 = vector.broadcast %24 : vector<1x64xf32> to vector<16x64xf32>
    %41 = arith.addf %39, %40 : vector<16x64xf32>
    %cst_21 = arith.constant 0.000000e+00 : f32
    %42 = vector.broadcast %cst_21 : f32 to vector<16x64xf32>
    %43 = arith.maximumf %41, %42 : vector<16x64xf32>
    %c19 = arith.constant 19 : index
    %c0_22 = arith.constant 0 : index
    %44 = vector.load %arg8[%c19, %c0_22] : memref<36x64xf32, #tpu.memory_space<vmem>>, vector<16x64xf32>
    tpu.vector_store %arg8[%c19, %c0_22], %43 {strides = array<i32>} : memref<36x64xf32, #tpu.memory_space<vmem>>, vector<16x64xf32>,
    %c0_23 = arith.constant 0 : index
    %c0_24 = arith.constant 0 : index
    %45 = vector.load %arg8[%c0_23, %c0_24] : memref<36x64xf32, #tpu.memory_space<vmem>>, vector<34x64xf32>
    %c0_25 = arith.constant 0 : index
    %c0_26 = arith.constant 0 : index
    %c0_27 = arith.constant 0 : index
    %46 = vector.load %arg5[%c0_25, %c0_26, %c0_27] : memref<3x64x128xf32, #tpu.memory_space<vmem>>, vector<1x64x128xf32>
    %47 = vector.shape_cast %46 : vector<1x64x128xf32> to vector<64x128xf32>
    %cst_28 = arith.constant dense<0.000000e+00> : vector<34x128xf32>
    %48 = tpu.matmul %45, %47, %cst_28 {dimension_numbers = #tpu.dot_dimension_numbers<[1], [0], [0], [1], [0, 0, 1, 1], [], []>} : vector<34x64xf32>, vector<64x128xf32>, vector<34x128xf32> -> vector<34x128xf32>
    %c1_29 = arith.constant 1 : index
    %c0_30 = arith.constant 0 : index
    %49 = vector.load %arg8[%c1_29, %c0_30] : memref<36x64xf32, #tpu.memory_space<vmem>>, vector<34x64xf32>
    %c1_31 = arith.constant 1 : index
    %c0_32 = arith.constant 0 : index
    %c0_33 = arith.constant 0 : index
    %50 = vector.load %arg5[%c1_31, %c0_32, %c0_33] : memref<3x64x128xf32, #tpu.memory_space<vmem>>, vector<1x64x128xf32>
    %51 = vector.shape_cast %50 : vector<1x64x128xf32> to vector<64x128xf32>
    %cst_34 = arith.constant dense<0.000000e+00> : vector<34x128xf32>
    %52 = tpu.matmul %49, %51, %cst_34 {dimension_numbers = #tpu.dot_dimension_numbers<[1], [0], [0], [1], [0, 0, 1, 1], [], []>} : vector<34x64xf32>, vector<64x128xf32>, vector<34x128xf32> -> vector<34x128xf32>
    %53 = arith.addf %48, %52 : vector<34x128xf32>
    %c2 = arith.constant 2 : index
    %c0_35 = arith.constant 0 : index
    %54 = vector.load %arg8[%c2, %c0_35] : memref<36x64xf32, #tpu.memory_space<vmem>>, vector<34x64xf32>
    %c2_36 = arith.constant 2 : index
    %c0_37 = arith.constant 0 : index
    %c0_38 = arith.constant 0 : index
    %55 = vector.load %arg5[%c2_36, %c0_37, %c0_38] : memref<3x64x128xf32, #tpu.memory_space<vmem>>, vector<1x64x128xf32>
    %56 = vector.shape_cast %55 : vector<1x64x128xf32> to vector<64x128xf32>
    %cst_39 = arith.constant dense<0.000000e+00> : vector<34x128xf32>
    %57 = tpu.matmul %54, %56, %cst_39 {dimension_numbers = #tpu.dot_dimension_numbers<[1], [0], [0], [1], [0, 0, 1, 1], [], []>} : vector<34x64xf32>, vector<64x128xf32>, vector<34x128xf32> -> vector<34x128xf32>
    %58 = arith.addf %53, %57 : vector<34x128xf32>
    %c0_40 = arith.constant 0 : index
    %c0_41 = arith.constant 0 : index
    %59 = vector.load %arg6[%c0_40, %c0_41] : memref<1x128xf32, #tpu.memory_space<vmem>>, vector<1x128xf32>
    %60 = vector.broadcast %59 : vector<1x128xf32> to vector<34x128xf32>
    %61 = arith.addf %58, %60 : vector<34x128xf32>
    %62 = vector.extract_strided_slice %61 {offsets = [0, 0], sizes = [16, 128], strides = [1, 1]} : vector<34x128xf32> to vector<16x128xf32>
    %c0_42 = arith.constant 0 : index
    %c0_43 = arith.constant 0 : index
    %c0_44 = arith.constant 0 : index
    %63 = vector.load %arg7[%c0_42, %c0_43, %c0_44] : memref<2x16x128xf32, #tpu.memory_space<vmem>>, vector<1x16x128xf32>
    %64 = vector.shape_cast %63 : vector<1x16x128xf32> to vector<16x128xf32>
    %65 = vector.shape_cast %62 : vector<16x128xf32> to vector<1x16x128xf32>
    tpu.vector_store %arg7[%c0_42, %c0_43, %c0_44], %65 {strides = array<i32>} : memref<2x16x128xf32, #tpu.memory_space<vmem>>, vector<1x16x128xf32>,
    %66 = vector.extract_strided_slice %61 {offsets = [18, 0], sizes = [16, 128], strides = [1, 1]} : vector<34x128xf32> to vector<16x128xf32>
    %c1_45 = arith.constant 1 : index
    %c0_46 = arith.constant 0 : index
    %c0_47 = arith.constant 0 : index
    %67 = vector.load %arg7[%c1_45, %c0_46, %c0_47] : memref<2x16x128xf32, #tpu.memory_space<vmem>>, vector<1x16x128xf32>
    %68 = vector.shape_cast %67 : vector<1x16x128xf32> to vector<16x128xf32>
    %69 = vector.shape_cast %66 : vector<16x128xf32> to vector<1x16x128xf32>
    tpu.vector_store %arg7[%c1_45, %c0_46, %c0_47], %69 {strides = array<i32>} : memref<2x16x128xf32, #tpu.memory_space<vmem>>, vector<1x16x128xf32>,
    return
  }
  func.func @transform_0(%arg0: i32) -> (i32, i32, i32) {
    %c0_i32 = arith.constant 0 : i32
    %c0_i32_0 = arith.constant 0 : i32
    %c0_i32_1 = arith.constant 0 : i32
    %c0_i32_2 = arith.constant 0 : i32
    return %c0_i32, %c0_i32_0, %c0_i32_1 : i32, i32, i32
  }
  func.func @transform_1(%arg0: i32) -> (i32, i32) {
    %c0_i32 = arith.constant 0 : i32
    %c0_i32_0 = arith.constant 0 : i32
    %c0_i32_1 = arith.constant 0 : i32
    return %c0_i32, %c0_i32_0 : i32, i32
  }
  func.func @transform_2(%arg0: i32) -> (i32, i32) {
    %c0_i32 = arith.constant 0 : i32
    %c0_i32_0 = arith.constant 0 : i32
    %c0_i32_1 = arith.constant 0 : i32
    return %c0_i32, %c0_i32_0 : i32, i32
  }
  func.func @transform_3(%arg0: i32) -> (i32, i32) {
    %c0_i32 = arith.constant 0 : i32
    %c0_i32_0 = arith.constant 0 : i32
    %c0_i32_1 = arith.constant 0 : i32
    return %c0_i32, %c0_i32_0 : i32, i32
  }
  func.func @transform_4(%arg0: i32) -> (i32, i32, i32) {
    %c0_i32 = arith.constant 0 : i32
    %c0_i32_0 = arith.constant 0 : i32
    %c0_i32_1 = arith.constant 0 : i32
    %c0_i32_2 = arith.constant 0 : i32
    return %c0_i32, %c0_i32_0, %c0_i32_1 : i32, i32, i32
  }
  func.func @transform_5(%arg0: i32) -> (i32, i32) {
    %c0_i32 = arith.constant 0 : i32
    %c0_i32_0 = arith.constant 0 : i32
    %c0_i32_1 = arith.constant 0 : i32
    return %c0_i32, %c0_i32_0 : i32, i32
  }
  func.func @transform_6(%arg0: i32) -> (i32, i32, i32) {
    %c0_i32 = arith.constant 0 : i32
    %c0_i32_0 = arith.constant 0 : i32
    %c0_i32_1 = arith.constant 0 : i32
    %c0_i32_2 = arith.constant 0 : i32
    return %c0_i32, %c0_i32_0, %c0_i32_1 : i32, i32, i32
  }
}

</mosaic_0001>

<bundles_post_ra>
// kernel: tpu_custom_call.1
= control target key start
LH: loop header
LB: loop body
LE: loop exit
PB: predicated region body
PF: predicated region fallthrough
CT: control target
= control target key end

     0   :  { %11 = vsyncpa [#allocation4], 0  ;;  %s757_s0 = inlined_call_operand.hbm [shape: f32[2,16,64], index: 0, kind: input, shape index: {}]   ;;  %s758_s1 = inlined_call_operand.hbm [shape: f32[1,64], index: 1, kind: input, shape index: {}]   ;;  %s759_s2 = inlined_call_operand.vmem [shape: f32[1,64], index: 2, kind: input, shape index: {}]   ;;  %s760_s3 = inlined_call_operand.hbm [shape: f32[64,64], index: 3, kind: input, shape index: {}]   ;;  %s761_s4 = inlined_call_operand.hbm [shape: f32[3,64,128], index: 4, kind: input, shape index: {}]   ;;  %s762_s5 = inlined_call_operand.vmem [shape: f32[1,128], index: 5, kind: input, shape index: {}]   ;;  %s763_s6 = inlined_call_operand.hbm [shape: f32[2,16,128], index: 6, kind: output, shape index: {}]  }
   0x1   :  { %12 = vsyncpa [#allocation7], 0 }
   0x2   :  { %13 = vsyncpa [#allocation10], 0  ;;  %s33_s23 = sshll.u32 %s758_s1, 4  ;;  %s34_s23 = int_to_ptr.hbm [resolvable:$true] %s33_s23 }
   0x3   :  { %14 = vsyncpa [#allocation5], 0  ;;  %s619_s24 = smov [#allocation6]   ;;  %s19_s28 = sshll.u32 %s757_s0, 4  ;;  %s20_s28 = int_to_ptr.hbm [resolvable:$true] %s19_s28 }
   0x4   :  { %s35_s25 = sshll.u32 %s619_s24, 4  ;;  %s620_s29 = smov [#allocation3]   ;;  %s36_s25 = int_to_ptr.vmem [resolvable:$true] %s35_s25 }
   0x5   :  { %38 = dma.hbm_to_vmem [thread:$0]  %s34_s23, 16, %s36_s25, [#allocation7]  }
   0x6   :  { %s21_s30 = sshll.u32 %s620_s29, 4  ;;  %s621_s7 = smov 128   ;;  %s22_s30 = int_to_ptr.vmem [resolvable:$true] %s21_s30 }
   0x7   :  { %s622_s8 = smov 8   ;;  %s45_s10 = sshll.u32 %s760_s3, 4  ;;  %s46_s10 = int_to_ptr.hbm [resolvable:$true] %s45_s10 }
   0x8   :  { %27 = dma.hbm_to_vmem [thread:$0]  %s20_s28, 512, %s22_s30, [#allocation4], %s621_s7, %s621_s7, %s622_s8  }
   0x9   :  { %s623_s11 = smov [#allocation8]   ;;  %s58_s14 = sshll.u32 %s761_s4, 4  ;;  %s59_s14 = int_to_ptr.hbm [resolvable:$true] %s58_s14 }
   0xa   :  { %s47_s12 = sshll.u32 %s623_s11, 4  ;;  %s624_s15 = smov [#allocation9]   ;;  %s48_s12 = int_to_ptr.vmem [resolvable:$true] %s47_s12 }
   0xb   :  { %53 = dma.hbm_to_vmem [thread:$0]  %s46_s10, 1024, %s48_s12, [#allocation7], %s621_s7, %s621_s7, %s622_s8  }
   0xc   :  { %s60_s16 = sshll.u32 %s624_s15, 4  ;;  %s61_s16 = int_to_ptr.vmem [resolvable:$true] %s60_s16 }
   0xd   :  { %66 = dma.hbm_to_vmem [thread:$0]  %s59_s14, 3072, %s61_s16, [#allocation10], %s621_s7, %s621_s7, %s622_s8  }
   0xe   :  { %611 = dma.done.wait [#allocation4], 512  }
   0xf   :  { %612 = vsyncadd [#allocation4], 4294966784 }
  0x10   :  { %613 = dma.done.wait [#allocation7], 1040  }
  0x11   :  { %614 = vsyncadd [#allocation7], 4294966256 }
  0x12   :  { %615 = dma.done.wait [#allocation10], 3072  }
  0x13   :  { %616 = vsyncadd [#allocation10], 4294964224  ;;  %v127_v0 = vld [vmem:[#allocation8 + $0x38] sm:$0xff]  ;;  %v126_v1 = vld [vmem:[#allocation8 + $0x30] sm:$0xff]  ;;  %vm89_vm0 = vcmask 523264   ;;  %v625_v63 = vmov 0.0  }
  0x14   :  { %139 = vmatpush.msra.mxu1 %v127_v0  ;;  %v125_v2 = vld [vmem:[#allocation8 + $0x28] sm:$0xff]  ;;  %v683_v3 = vld [vmem:[#allocation3] sm:$0xff]  ;;  %v689_v6 = vld [vmem:[#allocation3 + $0x18] sm:$0xff]  ;;  %210 = vst.msk [vmem:[#allocation2] sm:$0xff] %vm89_vm0, %v625_v63  ;;  %vm214_vm3 = vcmask 519168   ;;  %s446_s21 = sshll.u32 %s763_s6, 4  ;;  %s447_s21 = int_to_ptr.hbm [resolvable:$true] %s446_s21 }
  0x15   :  { %v685_v4 = vld [vmem:[#allocation3 + $0x8] sm:$0xff]  ;;  %v687_v5 = vld [vmem:[#allocation3 + $0x10] sm:$0xff]  ;;  %v90_v7 = vsel %vm89_vm0, %v683_v3, 0.0  ;;  %v103_v8 = vmul.f32 %v683_v3, %v683_v3  ;;  %v106_v15 = vmul.f32 %v689_v6, %v689_v6  ;;  %v123_v17 = vld [vmem:[#allocation8 + $0x18] sm:$0xff]  ;;  %v95_v18 = vsel %vm89_vm0, %v689_v6, 0.0  ;;  %211 = vst.msk [vmem:[#allocation2 + $0x8] sm:$0xff] %vm89_vm0, %v625_v63 }
  0x16   :  { %140 = vmatpush.msra.mxu1 %v126_v1  ;;  %v124_v9 = vld [vmem:[#allocation8 + $0x20] sm:$0xff]  ;;  %v91_v10 = vsel %vm89_vm0, %v685_v4, 0.0  ;;  %v93_v11 = vsel %vm89_vm0, %v687_v5, 0.0  ;;  %v104_v12 = vmul.f32 %v685_v4, %v685_v4  ;;  %v105_v14 = vmul.f32 %v687_v5, %v687_v5  ;;  %v122_v23 = vld [vmem:[#allocation8 + $0x10] sm:$0xff]  ;;  %v121_v27 = vld [vmem:[#allocation8 + $0x8] sm:$0xff]  ;;  %212 = vst.msk [vmem:[#allocation2 + $0x10] sm:$0xff] %vm89_vm0, %v625_v63 }
  0x17   :  { %v92_v13 = vadd.f32 %v91_v10, %v90_v7  ;;  %v107_v16 = vsel %vm89_vm0, %v103_v8, 0.0  ;;  %v112_v24 = vsel %vm89_vm0, %v106_v15, 0.0  ;;  %v120_v30 = vld [vmem:[#allocation8] sm:$0xff]  ;;  %v264_v52 = vld [vmem:[#allocation9 + $0x78] sm:$0xff]  ;;  %v263_v56 = vld [vmem:[#allocation9 + $0x70] sm:$0xff]  ;;  %213 = vst.msk [vmem:[#allocation2 + $0x18] sm:$0xff] %vm89_vm0, %v625_v63 }
  0x18   :  { %141 = vmatpush.msra.mxu1 %v125_v2  ;;  %v108_v19 = vsel %vm89_vm0, %v104_v12, 0.0  ;;  %v110_v22 = vsel %vm89_vm0, %v105_v14, 0.0  ;;  %v250_v53 = vld [vmem:[#allocation9 + $0x38] sm:$0xff]  ;;  %288 = vmatpush.msra.mxu2 %v264_v52  ;;  %v249_v57 = vld [vmem:[#allocation9 + $0x30] sm:$0xff]  ;;  %v262_v60 = vld [vmem:[#allocation9 + $0x68] sm:$0xff] }
  0x19   :  { %v94_v20 = vadd.f32 %v93_v11, %v92_v13  ;;  %v109_v21 = vadd.f32 %v108_v19, %v107_v16  ;;  %v372_v54 = vld [vmem:[#allocation9 + $0xb8] sm:$0xff]  ;;  %335 = vmatpush.msra.mxu3 %v250_v53  ;;  %v371_v58 = vld [vmem:[#allocation9 + $0xb0] sm:$0xff]  ;;  %v248_v61 = vld [vmem:[#allocation9 + $0x28] sm:$0xff]  ;;  %215 = vst.msk [vmem:[#allocation2 + $0x20] sm:$0xf] %vm214_vm3, %v625_v63 }
  0x1a   :  { %142 = vmatpush.msra.mxu1 %v124_v9  ;;  %396 = vmatpush.msra.mxu0 %v372_v54  ;;  %v370_v62 = vld [vmem:[#allocation9 + $0xa8] sm:$0xff]  ;;  %v369_v7 = vld [vmem:[#allocation9 + $0xa0] sm:$0xff]  ;;  %v260_v8 = vld [vmem:[#allocation9 + $0x58] sm:$0xff] }
  0x1b   :  { %v96_v25 = vadd.f32 %v95_v18, %v94_v20  ;;  %v111_v26 = vadd.f32 %v110_v22, %v109_v21  ;;  %289 = vmatpush.msra.mxu2 %v263_v56  ;;  %336 = vmatpush.msra.mxu3 %v249_v57  ;;  %v368_v11 = vld [vmem:[#allocation9 + $0x98] sm:$0xff]  ;;  %v259_v13 = vld [vmem:[#allocation9 + $0x50] sm:$0xff]  ;;  %v258_v18 = vld [vmem:[#allocation9 + $0x48] sm:$0xff] }
  0x1c   :  { %143 = vmatpush.msra.mxu1 %v123_v17  ;;  %397 = vmatpush.msra.mxu0 %v371_v58  ;;  %v245_v14 = vld [vmem:[#allocation9 + $0x10] sm:$0xff]  ;;  %v244_v19 = vld [vmem:[#allocation9 + $0x8] sm:$0xff]  ;;  %v257_v21 = vld [vmem:[#allocation9 + $0x40] sm:$0xff] }
  0x1d   :  { %v97_v28 = vrot.slane %v96_v25, 4  ;;  %v113_v29 = vadd.f32 %v112_v24, %v111_v26  ;;  %290 = vmatpush.msra.mxu2 %v262_v60  ;;  %337 = vmatpush.msra.mxu3 %v248_v61  ;;  %v367_v16 = vld [vmem:[#allocation9 + $0x90] sm:$0xff]  ;;  %v366_v20 = vld [vmem:[#allocation9 + $0x88] sm:$0xff]  ;;  %v243_v22 = vld [vmem:[#allocation9] sm:$0xff] }
  0x1e   :  { %144 = vmatpush.msra.mxu1 %v122_v23  ;;  %398 = vmatpush.msra.mxu0 %v370_v62 }
  0x1f   :  { %v98_v31 = vadd.f32 %v97_v28, %v96_v25  ;;  %v114_v32 = vrot.slane %v113_v29, 4 }
  0x20   :  { %145 = vmatpush.msra.mxu1 %v121_v27  ;;  %399 = vmatpush.msra.mxu0 %v369_v7 }
  0x21   :  { %v99_v33 = vrot.slane %v98_v31, 2  ;;  %v115_v34 = vadd.f32 %v114_v32, %v113_v29 }
  0x22   :  { %146 = vmatpush.msra.mxu1 %v120_v30  ;;  %400 = vmatpush.msra.mxu0 %v368_v11 }
  0x23   :  { %v100_v35 = vadd.f32 %v99_v33, %v98_v31  ;;  %v116_v36 = vrot.slane %v115_v34, 2  ;;  %v178_v31 = vld [vmem:[#allocation6] sm:$0x1] }
  0x24   :  { %162 = vmatpush.msrb.mxu1 %v127_v0  ;;  %v261_v0 = vld [vmem:[#allocation9 + $0x60] sm:$0xff]  ;;  %401 = vmatpush.msra.mxu0 %v367_v16 }
  0x25   :  { %v101_v37 = vrot.slane %v100_v35, 1  ;;  %v117_v38 = vadd.f32 %v116_v36, %v115_v34  ;;  %291 = vmatpush.msra.mxu2 %v261_v0  ;;  %v207_v36 = vld [vmem:[%s759_s2] sm:$0x1] }
  0x26   :  { %163 = vmatpush.msrb.mxu1 %v126_v1  ;;  %v247_v1 = vld [vmem:[#allocation9 + $0x20] sm:$0xff]  ;;  %402 = vmatpush.msra.mxu0 %v366_v20 }
  0x27   :  { %v102_v39 = vadd.f32 %v101_v37, %v100_v35  ;;  %v118_v40 = vrot.slane %v117_v38, 1  ;;  %338 = vmatpush.msra.mxu3 %v247_v1  ;;  %292 = vmatpush.msra.mxu2 %v260_v8  ;;  %v486_v8 = vld [vmem:[%s762_s5] ss:$0 sm:$0xff]  ;;  %s626_s5 = smov [#allocation11]  }
  0x28   :  { %164 = vmatpush.msrb.mxu1 %v125_v2  ;;  %s444_s18 = sshll.u32 %s626_s5, 4  ;;  %s445_s18 = int_to_ptr.vmem [resolvable:$true] %s444_s18 }
  0x29   :  { %461 = vmatmul.msk.f32.vlgmr.msra.gmra.mxu1 %vm89_vm0, %v102_v39  ;;  %v119_v41 = vadd.f32 %v118_v40, %v117_v38  ;;  %293 = vmatpush.msra.mxu2 %v259_v13 }
  0x2a   :  { %165 = vmatpush.msrb.mxu1 %v124_v9  ;;  %v246_v9 = vld [vmem:[#allocation9 + $0x18] sm:$0xff] }
  0x2b   :  { %339 = vmatpush.msra.mxu3 %v246_v9  ;;  %294 = vmatpush.msra.mxu2 %v258_v18 }
  0x2c   :  { %166 = vmatpush.msrb.mxu1 %v123_v17 }
  0x2d   :  { %340 = vmatpush.msra.mxu3 %v245_v14  ;;  %295 = vmatpush.msra.mxu2 %v257_v21 }
  0x2e   :  { %167 = vmatpush.msrb.mxu1 %v122_v23  ;;  %v365_v23 = vld [vmem:[#allocation9 + $0x80] sm:$0xff] }
  0x2f   :  { %341 = vmatpush.msra.mxu3 %v244_v19  ;;  %403 = vmatpush.msra.mxu0 %v365_v23 }
  0x30   :  { %168 = vmatpush.msrb.mxu1 %v121_v27 }
  0x31   :  { %342 = vmatpush.msra.mxu3 %v243_v22 }
  0x32   :  { %169 = vmatpush.msrb.mxu1 %v120_v30 }
  0x33   :  { %462 = vmatmul.msk.f32.vlgmr.msrb.gmra.mxu1 %vm89_vm0, %v119_v41 }
  0xa6   :  { %v148_v42 = vpop.f32.mrf.mxu1 }
  0xa7   :  { %v713_v43 = vmul.f32 0.001953125, %v148_v42 }
  0xa9   :  { %v176_v45 = vmul.f32 %v713_v43, %v713_v43 }
  0xb0   :  { %v171_v44 = vpop.f32.mrf.mxu1 }
  0xb1   :  { %v175_v46 = vmul.f32 0.001953125, %v171_v44 }
  0xb3   :  { %v177_v47 = vsub.f32 %v175_v46, %v176_v45 }
  0xb5   :  { %v179_v48 = vadd.f32 1e-05, %v177_v47 }
  0xb7   :  { %487 = vrsqrt.f32 %v179_v48  ;;  %vm187_vm1 = vcmp.eq.f32.partialorder %v179_v48, inf  ;;  %v190_v12 = vand.u32 2147483648, %v179_v48  ;;  %vm189_vm2 = vcmp.eq.f32.partialorder %v179_v48, 0.0 }
  0xbd   :  { %v488_v49 = vpop.eup %487 }
  0xbe   :  { %v181_v50 = vmul.f32 %v488_v49, %v179_v48 }
  0xc0   :  { %v182_v51 = vmul.f32 %v488_v49, %v181_v50 }
  0xc2   :  { %v183_v55 = vmul.f32 0.5, %v182_v51 }
  0xc4   :  { %v184_v59 = vsub.f32 1.5, %v183_v55 }
  0xc6   :  { %v185_v2 = vmul.f32 %v488_v49, %v184_v59 }
  0xc8   :  { %v186_v10 = vmul.f32 %v185_v2, %v179_v48 }
  0xca   :  { %v188_v15 = vsel %vm187_vm1, %v179_v48, %v186_v10 }
  0xcb   :  { %v191_v17 = vsel %vm189_vm2, %v190_v12, %v188_v15 }
  0xcc   :  { %489 = vrcp.f32 %v191_v17  ;;  %v203_v27 = vand.u32 2147483648, %v191_v17  ;;  %v201_v29 = vand.u32 2147483647, %v191_v17  ;;  %vm197_vm5 = vweird.f32 %v191_v17 }
  0xce   :  { %v204_v32 = vor.u32 1.1754944e-38, %v203_v27  ;;  %vm202_vm7 = vcmp.eq.f32.partialorder %v201_v29, 8.507059e+37 }
  0xd2   :  { %v490_v24 = vpop.eup %489 }
  0xd3   :  { %v193_v25 = vmul.f32 %v490_v24, %v191_v17  ;;  %vm198_vm4 = vweird.f32 %v490_v24 }
  0xd4   :  { %vm199_vm6 = vmor %vm197_vm5, %vm198_vm4 }
  0xd5   :  { %v194_v26 = vsub.f32 1.0, %v193_v25 }
  0xd7   :  { %v195_v28 = vmul.f32 %v490_v24, %v194_v26 }
  0xd9   :  { %v196_v30 = vadd.f32 %v490_v24, %v195_v28 }
  0xdb   :  { %v200_v33 = vsel %vm199_vm6, %v490_v24, %v196_v30 }
  0xdc   :  { %v205_v34 = vsel %vm202_vm7, %v204_v32, %v200_v33 }
  0xdd   :  { %v206_v35 = vmul.f32 %v205_v34, %v178_v31 }
  0xdf   :  { %v208_v37 = vmul.f32 %v206_v35, %v713_v43  ;;  %v217_v38 = vperm.slane %v206_v35, 0 }
  0xe1   :  { %v209_v39 = vsub.f32 %v207_v36, %v208_v37  ;;  %v219_v40 = vmul.f32 %v217_v38, %v683_v3  ;;  %v220_v42 = vmul.f32 %v217_v38, %v685_v4  ;;  %v230_v44 = vmul.f32 %v217_v38, %v687_v5 }
  0xe2   :  { %v231_v45 = vmul.f32 %v217_v38, %v689_v6 }
  0xe3   :  { %v222_v41 = vperm.slane %v209_v39, 0 }
  0xe5   :  { %v224_v46 = vadd.f32 %v222_v41, %v219_v40  ;;  %v225_v47 = vadd.f32 %v222_v41, %v220_v42  ;;  %v232_v48 = vadd.f32 %v230_v44, %v222_v41  ;;  %v233_v49 = vadd.f32 %v231_v45, %v222_v41 }
  0xe7   :  { %v226_v50 = vmax.f32 %v224_v46, 0.0  ;;  %v227_v51 = vmax.f32 %v225_v47, 0.0  ;;  %v234_v52 = vmax.f32 %v232_v48, 0.0  ;;  %v235_v53 = vmax.f32 %v233_v49, 0.0 }
  0xe9   :  { %228 = vst.msk [vmem:[#allocation2 + $0x1] sm:$0xff] %vm89_vm0, %v226_v50 }
  0xea   :  { %229 = vst.msk [vmem:[#allocation2 + $0x9] sm:$0xff] %vm89_vm0, %v227_v51 }
  0xeb   :  { %236 = vst.msk [vmem:[#allocation2 + $0x13] sm:$0xff] %vm89_vm0, %v234_v52 }
  0xec   :  { %237 = vst.msk [vmem:[#allocation2 + $0x1b] sm:$0xff] %vm89_vm0, %v235_v53 }
  0xf0   :  { %v251_v3 = vld [vmem:[#allocation2 + $0x1] sm:$0xff] }
  0xf1   :  { %v238_v4 = vld [vmem:[#allocation2] sm:$0xff]  ;;  %463 = vmatmul.msk.f32.vlgmr.msra.gmra.mxu2 %vm89_vm0, %v251_v3  ;;  %v252_v6 = vld [vmem:[#allocation2 + $0x9] sm:$0xff] }
  0xf2   :  { %468 = vmatmul.msk.f32.vlgmr.msra.gmra.mxu3 %vm89_vm0, %v238_v4  ;;  %v359_v5 = vld [vmem:[#allocation2 + $0x2] sm:$0xff]  ;;  %v360_v54 = vld [vmem:[#allocation2 + $0xa] sm:$0xff]  ;;  %v361_v57 = vld [vmem:[#allocation2 + $0x12] sm:$0xff] }
  0xf3   :  { %473 = vmatmul.msk.f32.vlgmr.msra.gmra.mxu0 %vm89_vm0, %v359_v5  ;;  %v239_v43 = vld [vmem:[#allocation2 + $0x8] sm:$0xff]  ;;  %v253_v55 = vld [vmem:[#allocation2 + $0x11] sm:$0xff]  ;;  %v254_v58 = vld [vmem:[#allocation2 + $0x19] sm:$0xff] }
  0xf4   :  { %v240_v56 = vld [vmem:[#allocation2 + $0x10] sm:$0xff]  ;;  %v241_v59 = vld [vmem:[#allocation2 + $0x18] sm:$0xff]  ;;  %v255_v61 = vld [vmem:[#allocation2 + $0x21] sm:$0x3] }
  0xf5   :  { %v362_v60 = vld [vmem:[#allocation2 + $0x1a] sm:$0xff]  ;;  %v363_v63 = vld [vmem:[#allocation2 + $0x22] sm:$0x3] }
  0xf6   :  { %v242_v62 = vld [vmem:[#allocation2 + $0x20] sm:$0x3] }
  0xf9   :  { %464 = vmatmul.msk.f32.gmra.mxu2 %vm89_vm0, %v252_v6 }
  0xfa   :  { %469 = vmatmul.msk.f32.gmra.mxu3 %vm89_vm0, %v239_v43 }
  0xfb   :  { %474 = vmatmul.msk.f32.gmra.mxu0 %vm89_vm0, %v360_v54 }
 0x101   :  { %465 = vmatmul.msk.f32.gmra.mxu2 %vm89_vm0, %v253_v55 }
 0x102   :  { %470 = vmatmul.msk.f32.gmra.mxu3 %vm89_vm0, %v240_v56 }
 0x103   :  { %475 = vmatmul.msk.f32.gmra.mxu0 %vm89_vm0, %v361_v57 }
 0x109   :  { %466 = vmatmul.msk.f32.gmra.mxu2 %vm89_vm0, %v254_v58 }
 0x10a   :  { %471 = vmatmul.msk.f32.gmra.mxu3 %vm89_vm0, %v241_v59 }
 0x10b   :  { %476 = vmatmul.msk.f32.gmra.mxu0 %vm89_vm0, %v362_v60 }
 0x111   :  { %467 = vmatmul.msk.f32.gmra.mxu2 %vm89_vm0, %v255_v61 }
 0x112   :  { %472 = vmatmul.msk.f32.gmra.mxu3 %vm89_vm0, %v242_v62 }
 0x113   :  { %477 = vmatmul.msk.f32.gmra.mxu0 %vm89_vm0, %v363_v63 }
 0x170   :  { %v405_v0 = vpop.f32.mrf.mxu0 }
 0x174   :  { %v297_v1 = vpop.f32.mrf.mxu2 }
 0x175   :  { %v344_v2 = vpop.f32.mrf.mxu3 }
 0x176   :  { %v345_v7 = vadd.f32 %v344_v2, %v297_v1 }
 0x178   :  { %v420_v9 = vadd.f32 %v405_v0, %v345_v7  ;;  %v408_v10 = vpop.f32.mrf.mxu0 }
 0x17a   :  { %v429_v11 = vadd.f32 %v486_v8, %v420_v9 }
 0x17c   :  { %434 = vst [vmem:[#allocation11] sm:$0xff] %v429_v11  ;;  %v300_v12 = vpop.f32.mrf.mxu2 }
 0x17d   :  { %v347_v13 = vpop.f32.mrf.mxu3 }
 0x17e   :  { %v348_v14 = vadd.f32 %v347_v13, %v300_v12 }
 0x180   :  { %v421_v15 = vadd.f32 %v408_v10, %v348_v14  ;;  %v411_v17 = vpop.f32.mrf.mxu0 }
 0x182   :  { %v430_v16 = vadd.f32 %v486_v8, %v421_v15 }
 0x184   :  { %435 = vst [vmem:[#allocation11 + $0x8] sm:$0xff] %v430_v16  ;;  %v303_v18 = vpop.f32.mrf.mxu2 }
 0x185   :  { %v350_v19 = vpop.f32.mrf.mxu3 }
 0x186   :  { %v351_v20 = vadd.f32 %v350_v19, %v303_v18 }
 0x188   :  { %v422_v21 = vadd.f32 %v411_v17, %v351_v20  ;;  %v414_v23 = vpop.f32.mrf.mxu0 }
 0x18a   :  { %v431_v22 = vadd.f32 %v486_v8, %v422_v21 }
 0x18c   :  { %437 = vst [vmem:[#allocation11 + $0xe] sm:$0xfc] %v431_v22  ;;  %v306_v24 = vpop.f32.mrf.mxu2 }
 0x18d   :  { %v353_v25 = vpop.f32.mrf.mxu3 }
 0x18e   :  { %v354_v26 = vadd.f32 %v353_v25, %v306_v24 }
 0x190   :  { %v423_v27 = vadd.f32 %v414_v23, %v354_v26  ;;  %v417_v32 = vpop.f32.mrf.mxu0 }
 0x192   :  { %v432_v28 = vadd.f32 %v486_v8, %v423_v27 }
 0x194   :  { %438 = vst [vmem:[#allocation11 + $0x16] sm:$0xff] %v432_v28  ;;  %v309_v29 = vpop.f32.mrf.mxu2 }
 0x195   :  { %v356_v30 = vpop.f32.mrf.mxu3 }
 0x196   :  { %v357_v31 = vadd.f32 %v356_v30, %v309_v29 }
 0x198   :  { %v424_v33 = vadd.f32 %v417_v32, %v357_v31 }
 0x19a   :  { %v433_v34 = vadd.f32 %v486_v8, %v424_v33 }
 0x19c   :  { %439 = vst [vmem:[#allocation11 + $0x1e] sm:$0x3] %v433_v34 }
 0x19d   :  { %452 = dma.vmem_to_hbm [thread:$0]  %s445_s18, 512, %s447_s21, [#allocation5], %s621_s7, %s621_s7, %s622_s8  }
 0x19e   :  { %617 = dma.done.wait [#allocation5], 512  }
 0x19f   :  { %618 = vsyncadd [#allocation5], 4294966784 }
 0x1a0   :  { %457 = vsyncpa [#allocation4], 1 }
 0x1a1   :  { %458 = vsyncpa [#allocation7], 1 }
 0x1a2   :  { %459 = vsyncpa [#allocation10], 1 }
 0x1a3   :  { %460 = vsyncpa [#allocation5], 1 }

</bundles_post_ra>
